<compile_context>
chip_gen: v5e
topology: v5e:2x2
jax: 0.10.0
libtpu: 0.0.40
codegen_flags: <defaults>
</compile_context>

<pallas_src>
import jax
import jax.numpy as jnp
from jax.experimental import pallas as pl
from jax.experimental.pallas import tpu as pltpu

NETWORK_WIDTH = 64
NZ = 1
N_FEATURES = 3            # ['AC power', 'SOCave292', 'BMSmaxPackTemperature']
IN_DIM = N_FEATURES + NZ  # 4
DEFAULT_TILE_M = 8192     # batch rows per grid step (multiple of 128); sweepable

assert IN_DIM == 4  # layer-1 FMA chain below is unrolled for 4 features


def _round_up(n, m):
    return ((n + m - 1) // m) * m


def _pick_tile(batch, tile_m):
    """Batch rows per grid step.

    Cap at tile_m (rounded to 128 lanes).  For B > 256 also cap at ceil(B/2)
    so the 'parallel' grid axis has >= 2 steps and v7x's second TensorCore
    gets work; tiles stay large enough that per-step overhead is amortized.
    """
    cap = _round_up(max(tile_m, 128), 128)
    full = _round_up(max(batch, 1), 128)
    if batch > 256:
        half = _round_up(-(-batch // 2), 128)
        return min(cap, half)
    return min(cap, full)


def _generator_kernel(x_ref, w1_ref, b1_ref, w2_ref, b2_ref, w3_ref, b3_ref,
                      o_ref):
    """One batch tile of the 3-layer MLP, transposed-feature layout.

    x_ref : (IN_DIM, TM) f32   batch on the lane axis
    w1    : (64, IN_DIM) f32   PyTorch (out, in) layout
    b1,b2 : (64, 1)      f32
    w2    : (64, 64)     bf16 (or f32)  -- layer-2 MXU operand dtype
    w3    : (64, 1)      f32   column vector (= PyTorch W3^T)
    b3    : (1, 1)       f32   SMEM scalar
    o_ref : (1, TM)      f32   lane-dense output row
    """
    xT = x_ref[...]                              # (4, TM)
    w1 = w1_ref[...]                             # (64, 4)

    # ---- Layer 1: Linear(4 -> 64) as 4 broadcast-FMAs on the VPU.
    # Single fused expression: one producer pass for h1 (keeps v5e's single
    # vector-store slot from becoming the saturating slot).
    acc = (w1[:, 0:1] * xT[0:1, :]
           + w1[:, 1:2] * xT[1:2, :]
           + w1[:, 2:3] * xT[2:3, :]
           + w1[:, 3:4] * xT[3:4, :])            # (64, TM) f32
    # ReLU fused with the cast to the layer-2 MXU operand dtype (bf16 path
    # produces h1 directly in bf16; f32 path keeps this a no-op cast).
    h1 = jnp.maximum(acc + b1_ref[...], 0.0).astype(w2_ref.dtype)

    # ---- Layer 2: Linear(64 -> 64) on the MXU, f32 accumulation.
    h2 = jnp.dot(w2_ref[...], h1, preferred_element_type=jnp.float32)
    h2 = jnp.maximum(h2 + b2_ref[...], 0.0)      # (64, TM) f32

    # ---- Layer 3: Linear(64 -> 1) as VPU multiply + cross-sublane reduce.
    # Produces a lane-dense (1, TM) row -> unmasked vector stores + dense HBM
    # writeback (no N=1 MXU matmul, no masked vst.msk).
    out = jnp.sum(h2 * w3_ref[...], axis=0, keepdims=True) + b3_ref[0, 0]
    o_ref[...] = out.astype(o_ref.dtype)


def generator_forward(x, params, *, tile_m=DEFAULT_TILE_M, feature_major=False,
                      use_bf16_matmul=True):
    """Forward pass of the Generator.

    x: (B, 4) float-like, or (4, B) if feature_major=True (preferred: avoids
       the wrapper-side transpose pass entirely).
    Returns (B, 1) float32.
    """
    w1, b1, w2, b2, w3, b3 = params
    B = x.shape[1] if feature_major else x.shape[0]

    tm = _pick_tile(B, tile_m)
    b_pad = _round_up(B, tm)
    grid = (b_pad // tm,)

    if feature_major:
        # x already (4, B): only pad the lane (batch) axis.
        x_t = jnp.pad(x.astype(jnp.float32), ((0, 0), (0, b_pad - B)))
    else:
        # Single fused convert+pad+transpose pass; padded rows are zeros and
        # are sliced off after the kernel.  Callers that can keep x
        # feature-major upstream should pass feature_major=True instead.
        x_t = jnp.pad(x.astype(jnp.float32), ((0, b_pad - B), (0, 0))).T

    # MXU operand dtype for the 64x64 matmul (bf16 on all generations cuts MXU
    # passes ~3x vs f32xf32; accumulation stays f32 in the kernel).
    w2_mm = w2.astype(jnp.bfloat16) if use_bf16_matmul else w2

    vmem = pltpu.MemorySpace.VMEM
    resident = lambda i: (0, 0)   # weights/biases: same block every grid step

    out = pl.pallas_call(
        _generator_kernel,
        out_shape=jax.ShapeDtypeStruct((1, b_pad), jnp.float32),
        grid=grid,
        in_specs=[
            pl.BlockSpec((IN_DIM, tm), lambda i: (0, i), memory_space=vmem),
            pl.BlockSpec((NETWORK_WIDTH, IN_DIM), resident, memory_space=vmem),
            pl.BlockSpec((NETWORK_WIDTH, 1), resident, memory_space=vmem),
            pl.BlockSpec((NETWORK_WIDTH, NETWORK_WIDTH), resident, memory_space=vmem),
            pl.BlockSpec((NETWORK_WIDTH, 1), resident, memory_space=vmem),
            pl.BlockSpec((NETWORK_WIDTH, 1), resident, memory_space=vmem),
            pl.BlockSpec(memory_space=pltpu.MemorySpace.SMEM),  # b3 scalar
        ],
        out_specs=pl.BlockSpec((1, tm), lambda i: (0, i), memory_space=vmem),
        compiler_params=pltpu.CompilerParams(
            dimension_semantics=("parallel",),   # megacore split of the batch
            # Per-tile footprint at TM=8192 is ~6-8 MiB (x 128 KB, out 32 KB,
            # (64,TM) temporaries ~1-2 MiB each) -> 16 MiB is comfortable on
            # v5e/v6e/v7x.  If tile_m is swept higher, keep this <= ~32 MiB on
            # v7x (64 MiB physical VMEM).
            vmem_limit_bytes=16 * 1024 * 1024,
        ),
    )(x_t, w1, b1, w2_mm, b2, w3, b3)

    return out.reshape(b_pad, 1)[:B]


def init_params(key):
    """Deterministic init mimicking nn.Linear default (U(-1/sqrt(fan_in), ..)).

    Weights kept in the PyTorch (out, in) layout; biases as columns.
    """
    def linear_init(k, fan_in, fan_out):
        kw, kb = jax.random.split(k)
        bound = 1.0 / jnp.sqrt(jnp.float32(fan_in))
        w = jax.random.uniform(kw, (fan_out, fan_in), jnp.float32, -bound, bound)
        b = jax.random.uniform(kb, (fan_out, 1), jnp.float32, -bound, bound)
        return w, b

    k1, k2, k3 = jax.random.split(key, 3)
    w1, b1 = linear_init(k1, IN_DIM, NETWORK_WIDTH)          # (64,4), (64,1)
    w2, b2 = linear_init(k2, NETWORK_WIDTH, NETWORK_WIDTH)   # (64,64), (64,1)
    w3t, b3 = linear_init(k3, NETWORK_WIDTH, 1)              # (1,64), (1,1)
    w3 = w3t.T                                               # (64,1) column
    return (w1, b1, w2, b2, w3, b3)


def generator_reference(x, params):
    """Pure-JAX f32 reference of the same forward pass."""
    w1, b1, w2, b2, w3, b3 = params
    h = jnp.maximum(x @ w1.T + b1.T, 0.0)
    h = jnp.maximum(h @ w2.T + b2.T, 0.0)
    return h @ w3 + b3


if __name__ == "__main__":
    key = jax.random.PRNGKey(0)
    pkey, xkey1, xkey2 = jax.random.split(key, 3)
    params = init_params(pkey)

    # 1) Small batch, exact f32 path (single grid step): tight tolerance.
    B = 8
    x = jax.random.normal(xkey1, (B, IN_DIM), jnp.float32)
    out = jax.block_until_ready(
        generator_forward(x, params, use_bf16_matmul=False))
    ref = generator_reference(x, params)
    assert out.shape == (B, 1), out.shape
    assert jnp.allclose(out, ref, atol=1e-4, rtol=1e-4), \
        "mismatch vs reference (B=8, f32 path)"

    # 2) Mid-size batch, default bf16-MXU path: exercises >=2 pipelined grid
    #    steps (tm = ceil(B/2) rounded to 128) and batch padding.  bf16 MXU
    #    operands with f32 accumulation -> loosened tolerance.
    B2 = 1000
    x2 = jax.random.normal(xkey2, (B2, IN_DIM), jnp.float32)
    out2 = jax.block_until_ready(generator_forward(x2, params))
    ref2 = generator_reference(x2, params)
    assert out2.shape == (B2, 1), out2.shape
    assert jnp.allclose(out2, ref2, atol=5e-2, rtol=5e-2), \
        "mismatch vs reference (B=1000, bf16 MXU path)"

    # 3) Feature-major input path (no wrapper transpose), same batch.
    out3 = jax.block_until_ready(
        generator_forward(x2.T, params, feature_major=True))
    assert out3.shape == (B2, 1), out3.shape
    assert jnp.allclose(out3, ref2, atol=5e-2, rtol=5e-2), \
        "mismatch vs reference (B=1000, feature-major path)"

    print("KERNEL_OK")
</pallas_src>

<mosaic_0001>
module attributes {stable_mosaic.version = 11 : i64} {
  func.func @_generator_kernel(%arg0: i32, %arg1: memref<4x128xf32, #tpu.memory_space<vmem>>, %arg2: memref<64x4xf32, #tpu.memory_space<vmem>>, %arg3: memref<64x1xf32, #tpu.memory_space<vmem>>, %arg4: memref<64x64xf32, #tpu.memory_space<vmem>>, %arg5: memref<64x1xf32, #tpu.memory_space<vmem>>, %arg6: memref<64x1xf32, #tpu.memory_space<vmem>>, %arg7: memref<1x1xf32, #tpu.memory_space<smem>>, %arg8: memref<1x128xf32, #tpu.memory_space<vmem>>) attributes {dimension_semantics = [#tpu.dimension_semantics<parallel>], iteration_bounds = array<i64: 1>, scalar_prefetch = 0 : i64, scratch_operands = 0 : i64, tpu.core_type = #tpu.core_type<tc>, window_params = [{transform_indices = @transform_0, window_bounds = array<i64: 4, 128>}, {pipeline_mode = #tpu.pipeline_mode<synchronous>, transform_indices = @transform_1, window_bounds = array<i64: 64, 4>}, {pipeline_mode = #tpu.pipeline_mode<synchronous>, transform_indices = @transform_2, window_bounds = array<i64: 64, 1>}, {pipeline_mode = #tpu.pipeline_mode<synchronous>, transform_indices = @transform_3, window_bounds = array<i64: 64, 64>}, {pipeline_mode = #tpu.pipeline_mode<synchronous>, transform_indices = @transform_4, window_bounds = array<i64: 64, 1>}, {pipeline_mode = #tpu.pipeline_mode<synchronous>, transform_indices = @transform_5, window_bounds = array<i64: 64, 1>}, {transform_indices = @transform_6, window_bounds = array<i64: 1, 1>}, {transform_indices = @transform_7, window_bounds = array<i64: 1, 128>}]} {
    %c0 = arith.constant 0 : index
    %c0_0 = arith.constant 0 : index
    %0 = vector.load %arg1[%c0, %c0_0] : memref<4x128xf32, #tpu.memory_space<vmem>>, vector<4x128xf32>
    %c0_1 = arith.constant 0 : index
    %c0_2 = arith.constant 0 : index
    %1 = vector.load %arg2[%c0_1, %c0_2] : memref<64x4xf32, #tpu.memory_space<vmem>>, vector<64x4xf32>
    %2 = vector.extract_strided_slice %1 {offsets = [0, 0], sizes = [64, 1], strides = [1, 1]} : vector<64x4xf32> to vector<64x1xf32>
    %3 = vector.extract_strided_slice %0 {offsets = [0, 0], sizes = [1, 128], strides = [1, 1]} : vector<4x128xf32> to vector<1x128xf32>
    %4 = vector.broadcast %2 : vector<64x1xf32> to vector<64x128xf32>
    %5 = vector.broadcast %3 : vector<1x128xf32> to vector<64x128xf32>
    %6 = arith.mulf %4, %5 : vector<64x128xf32>
    %7 = vector.extract_strided_slice %1 {offsets = [0, 1], sizes = [64, 1], strides = [1, 1]} : vector<64x4xf32> to vector<64x1xf32>
    %8 = vector.extract_strided_slice %0 {offsets = [1, 0], sizes = [1, 128], strides = [1, 1]} : vector<4x128xf32> to vector<1x128xf32>
    %9 = vector.broadcast %7 : vector<64x1xf32> to vector<64x128xf32>
    %10 = vector.broadcast %8 : vector<1x128xf32> to vector<64x128xf32>
    %11 = arith.mulf %9, %10 : vector<64x128xf32>
    %12 = arith.addf %6, %11 : vector<64x128xf32>
    %13 = vector.extract_strided_slice %1 {offsets = [0, 2], sizes = [64, 1], strides = [1, 1]} : vector<64x4xf32> to vector<64x1xf32>
    %14 = vector.extract_strided_slice %0 {offsets = [2, 0], sizes = [1, 128], strides = [1, 1]} : vector<4x128xf32> to vector<1x128xf32>
    %15 = vector.broadcast %13 : vector<64x1xf32> to vector<64x128xf32>
    %16 = vector.broadcast %14 : vector<1x128xf32> to vector<64x128xf32>
    %17 = arith.mulf %15, %16 : vector<64x128xf32>
    %18 = arith.addf %12, %17 : vector<64x128xf32>
    %19 = vector.extract_strided_slice %1 {offsets = [0, 3], sizes = [64, 1], strides = [1, 1]} : vector<64x4xf32> to vector<64x1xf32>
    %20 = vector.extract_strided_slice %0 {offsets = [3, 0], sizes = [1, 128], strides = [1, 1]} : vector<4x128xf32> to vector<1x128xf32>
    %21 = vector.broadcast %19 : vector<64x1xf32> to vector<64x128xf32>
    %22 = vector.broadcast %20 : vector<1x128xf32> to vector<64x128xf32>
    %23 = arith.mulf %21, %22 : vector<64x128xf32>
    %24 = arith.addf %18, %23 : vector<64x128xf32>
    %c0_3 = arith.constant 0 : index
    %c0_4 = arith.constant 0 : index
    %25 = vector.load %arg3[%c0_3, %c0_4] : memref<64x1xf32, #tpu.memory_space<vmem>>, vector<64x1xf32>
    %26 = vector.broadcast %25 : vector<64x1xf32> to vector<64x128xf32>
    %27 = arith.addf %24, %26 : vector<64x128xf32>
    %cst = arith.constant 0.000000e+00 : f32
    %28 = vector.broadcast %cst : f32 to vector<64x128xf32>
    %29 = arith.maximumf %27, %28 : vector<64x128xf32>
    %c0_5 = arith.constant 0 : index
    %c0_6 = arith.constant 0 : index
    %30 = vector.load %arg4[%c0_5, %c0_6] : memref<64x64xf32, #tpu.memory_space<vmem>>, vector<64x64xf32>
    %cst_7 = arith.constant dense<0.000000e+00> : vector<64x128xf32>
    %31 = tpu.matmul %30, %29, %cst_7 {dimension_numbers = #tpu.dot_dimension_numbers<[1], [0], [0], [1], [0, 0, 1, 1], [], []>} : vector<64x64xf32>, vector<64x128xf32>, vector<64x128xf32> -> vector<64x128xf32>
    %c0_8 = arith.constant 0 : index
    %c0_9 = arith.constant 0 : index
    %32 = vector.load %arg5[%c0_8, %c0_9] : memref<64x1xf32, #tpu.memory_space<vmem>>, vector<64x1xf32>
    %33 = vector.broadcast %32 : vector<64x1xf32> to vector<64x128xf32>
    %34 = arith.addf %31, %33 : vector<64x128xf32>
    %cst_10 = arith.constant 0.000000e+00 : f32
    %35 = vector.broadcast %cst_10 : f32 to vector<64x128xf32>
    %36 = arith.maximumf %34, %35 : vector<64x128xf32>
    %c0_11 = arith.constant 0 : index
    %c0_12 = arith.constant 0 : index
    %37 = vector.load %arg6[%c0_11, %c0_12] : memref<64x1xf32, #tpu.memory_space<vmem>>, vector<64x1xf32>
    %38 = vector.broadcast %37 : vector<64x1xf32> to vector<64x128xf32>
    %39 = arith.mulf %36, %38 : vector<64x128xf32>
    %cst_13 = arith.constant dense<0.000000e+00> : vector<128xf32>
    %40 = vector.multi_reduction <add>, %39, %cst_13 [0] : vector<64x128xf32> to vector<128xf32>
    %41 = vector.shape_cast %40 : vector<128xf32> to vector<1x128xf32>
    %c0_14 = arith.constant 0 : index
    %c0_15 = arith.constant 0 : index
    %42 = memref.load %arg7[%c0_14, %c0_15] : memref<1x1xf32, #tpu.memory_space<smem>>
    %43 = vector.broadcast %42 : f32 to vector<1x128xf32>
    %44 = arith.addf %41, %43 : vector<1x128xf32>
    %c0_16 = arith.constant 0 : index
    %c0_17 = arith.constant 0 : index
    %45 = vector.load %arg8[%c0_16, %c0_17] : memref<1x128xf32, #tpu.memory_space<vmem>>, vector<1x128xf32>
    tpu.vector_store %arg8[%c0_16, %c0_17], %44 {strides = array<i32>} : memref<1x128xf32, #tpu.memory_space<vmem>>, vector<1x128xf32>,
    return
  }
  func.func @transform_0(%arg0: i32) -> (i32, i32) {
    %c0_i32 = arith.constant 0 : i32
    %c0_i32_0 = arith.constant 0 : i32
    return %c0_i32, %arg0 : i32, i32
  }
  func.func @transform_1(%arg0: i32) -> (i32, i32) {
    %c0_i32 = arith.constant 0 : i32
    %c0_i32_0 = arith.constant 0 : i32
    %c0_i32_1 = arith.constant 0 : i32
    return %c0_i32, %c0_i32_0 : i32, i32
  }
  func.func @transform_2(%arg0: i32) -> (i32, i32) {
    %c0_i32 = arith.constant 0 : i32
    %c0_i32_0 = arith.constant 0 : i32
    %c0_i32_1 = arith.constant 0 : i32
    return %c0_i32, %c0_i32_0 : i32, i32
  }
  func.func @transform_3(%arg0: i32) -> (i32, i32) {
    %c0_i32 = arith.constant 0 : i32
    %c0_i32_0 = arith.constant 0 : i32
    %c0_i32_1 = arith.constant 0 : i32
    return %c0_i32, %c0_i32_0 : i32, i32
  }
  func.func @transform_4(%arg0: i32) -> (i32, i32) {
    %c0_i32 = arith.constant 0 : i32
    %c0_i32_0 = arith.constant 0 : i32
    %c0_i32_1 = arith.constant 0 : i32
    return %c0_i32, %c0_i32_0 : i32, i32
  }
  func.func @transform_5(%arg0: i32) -> (i32, i32) {
    %c0_i32 = arith.constant 0 : i32
    %c0_i32_0 = arith.constant 0 : i32
    %c0_i32_1 = arith.constant 0 : i32
    return %c0_i32, %c0_i32_0 : i32, i32
  }
  func.func @transform_6(%arg0: i32) -> (i32, i32) {
    %c0_i32 = arith.constant 0 : i32
    %c0_i32_0 = arith.constant 0 : i32
    %c0_i32_1 = arith.constant 0 : i32
    return %c0_i32, %c0_i32_0 : i32, i32
  }
  func.func @transform_7(%arg0: i32) -> (i32, i32) {
    %c0_i32 = arith.constant 0 : i32
    %c0_i32_0 = arith.constant 0 : i32
    return %c0_i32, %arg0 : i32, i32
  }
}

</mosaic_0001>

<bundles_post_ra>
// kernel: tpu_custom_call.1
= control target key start
LH: loop header
LB: loop body
LE: loop exit
PB: predicated region body
PF: predicated region fallthrough
CT: control target
= control target key end

     0   :  { %v599_v3 = vmov 0   ;;  %s882_s0 = inlined_call_operand.vmem [shape: f32[4,128], index: 0, kind: input, shape index: {}]   ;;  %s883_s1 = inlined_call_operand.vmem [shape: f32[64,4], index: 1, kind: input, shape index: {}]   ;;  %s884_s2 = inlined_call_operand.vmem [shape: f32[64,1], index: 2, kind: input, shape index: {}]   ;;  %s885_s3 = inlined_call_operand.vmem [shape: f32[64,64], index: 3, kind: input, shape index: {}]   ;;  %s886_s4 = inlined_call_operand.vmem [shape: f32[64,1], index: 4, kind: input, shape index: {}]   ;;  %s887_s5 = inlined_call_operand.vmem [shape: f32[64,1], index: 5, kind: input, shape index: {}]   ;;  %s888_s6 = inlined_call_operand.<no memory space> [shape: f32[1,1], index: 6, kind: input, shape index: {}]   ;;  %s889_s7 = inlined_call_operand.hbm [shape: f32[1,128], index: 7, kind: output, shape index: {}]  }
   0x1   :  { %v33_v0 = vld [vmem:[%s883_s1 + $0x20] sm:$0xff]  ;;  %v650_v1 = vld [vmem:[%s883_s1 + $0x10] sm:$0xff]  ;;  %555 = vset.pattern.permute.xlu2 %v599_v3  ;;  %554 = vset.pattern.permute.xlu1 %v599_v3 }
   0x2   :  { %v655_v2 = vld [vmem:[%s883_s1] sm:$0xff]  ;;  %553 = vset.pattern.permute.xlu0 %v599_v3  ;;  %59 = vperm.xlu2 %555, %v33_v0  }
   0x3   :  { %13 = vsyncpa [#allocation4], 0  ;;  %49 = vperm.xlu1 %554, %v650_v1   ;;  %39 = vperm.xlu0 %553, %v655_v2   ;;  %v34_v4 = vld [vmem:[%s883_s1 + $0x28] sm:$0xff]  ;;  %v32_v5 = vld [vmem:[%s883_s1 + $0x18] sm:$0xff]  ;;  %v600_v9 = vmov 1   ;;  %v601_v10 = vmov 2  }
   0x4   :  { %v671_v6 = vld [vmem:[%s883_s1 + $0x8] sm:$0xff]  ;;  %v36_v7 = vld [vmem:[%s883_s1 + $0x38] sm:$0xff]  ;;  %v35_v8 = vld [vmem:[%s883_s1 + $0x30] sm:$0xff]  ;;  %v602_v11 = vmov 3   ;;  %vm353_vm0 = vcmask 523264   ;;  %s603_s29 = smov [#allocation3]  }
   0x5   :  { %v237_v12 = vld [vmem:[%s884_s2 + $0x20] sm:$0xff]  ;;  %v240_v13 = vld [vmem:[%s884_s2 + $0x38] sm:$0xff]  ;;  %v234_v14 = vld [vmem:[%s884_s2 + $0x8] sm:$0xff]  ;;  %s505_s30 = sshll.u32 %s603_s29, 4  ;;  %s507_s10 = sshll.u32 %s889_s7, 4  ;;  %s506_s30 = int_to_ptr.vmem [resolvable:$true] %s505_s30  ;;  %s508_s10 = int_to_ptr.hbm [resolvable:$true] %s507_s10 }
   0x6   :  { %v239_v15 = vld [vmem:[%s884_s2 + $0x30] sm:$0xff]  ;;  %v306_v17 = vld [vmem:[%s886_s4 + $0x8] sm:$0xff]  ;;  %v309_v20 = vld [vmem:[%s886_s4 + $0x20] sm:$0xff] }
   0x7   :  { %v238_v18 = vld [vmem:[%s884_s2 + $0x28] sm:$0xff]  ;;  %v236_v21 = vld [vmem:[%s884_s2 + $0x18] sm:$0xff]  ;;  %v429_v22 = vld [vmem:[%s887_s5 + $0x10] sm:$0xff] }
   0x8   :  { %v235_v24 = vld [vmem:[%s884_s2 + $0x10] sm:$0xff]  ;;  %v728_v25 = vld [vmem:[%s882_s0] sm:$0xf]  ;;  %v432_v39 = vld [vmem:[%s887_s5 + $0x28] sm:$0xff] }
   0x9   :  { %v731_v26 = vperm.slane %v728_v25, 1  ;;  %v735_v27 = vperm.slane %v728_v25, 0  ;;  %v311_v31 = vld [vmem:[%s886_s4 + $0x30] sm:$0xff]  ;;  %v305_v34 = vld [vmem:[%s886_s4] sm:$0xff]  ;;  %v308_v42 = vld [vmem:[%s886_s4 + $0x18] sm:$0xff]  ;;  %v769_v46 = vperm.slane %v728_v25, 2 }
   0xa   :  { %64 = vperm.xlu2 %555, %v34_v4   ;;  %v233_v36 = vld [vmem:[%s884_s2] sm:$0xff]  ;;  %v307_v44 = vld [vmem:[%s886_s4 + $0x10] sm:$0xff]  ;;  %v428_v49 = vld [vmem:[%s887_s5 + $0x8] sm:$0xff] }
   0xb   :  { %54 = vperm.xlu1 %554, %v32_v5   ;;  %44 = vperm.xlu0 %553, %v671_v6   ;;  %v427_v51 = vld [vmem:[%s887_s5] sm:$0xff]  ;;  %v430_v56 = vld [vmem:[%s887_s5 + $0x18] sm:$0xff]  ;;  %v310_v57 = vld [vmem:[%s886_s4 + $0x28] sm:$0xff] }
   0xc   :  { %v312_v60 = vld [vmem:[%s886_s4 + $0x38] sm:$0xff]  ;;  %v431_v61 = vld [vmem:[%s887_s5 + $0x20] sm:$0xff] }
  0x12   :  { %556 = vset.pattern.permute.xlu2 %v600_v9 }
  0x13   :  { %74 = vperm.xlu1 %554, %v36_v7   ;;  %69 = vperm.xlu0 %553, %v35_v8  }
  0x14   :  { %87 = vperm.xlu2 %556, %v655_v2  }
  0x1b   :  { %558 = vset.pattern.permute.xlu1 %v600_v9  ;;  %557 = vset.pattern.permute.xlu0 %v600_v9 }
  0x1c   :  { %95 = vperm.xlu1 %558, %v650_v1   ;;  %99 = vperm.xlu2 %556, %v32_v5  }
  0x1d   :  { %91 = vperm.xlu0 %557, %v671_v6  }
  0x24   :  { %103 = vperm.xlu1 %558, %v33_v0   ;;  %107 = vperm.xlu2 %556, %v34_v4  }
  0x25   :  { %111 = vperm.xlu0 %557, %v35_v8  }
  0x2c   :  { %115 = vperm.xlu1 %558, %v36_v7   ;;  %559 = vset.pattern.permute.xlu2 %v601_v10 }
  0x2d   :  { %560 = vset.pattern.permute.xlu0 %v601_v10  ;;  %136 = vperm.xlu2 %559, %v655_v2  }
  0x2e   :  { %140 = vperm.xlu0 %560, %v671_v6  }
  0x34   :  { %561 = vset.pattern.permute.xlu1 %v601_v10 }
  0x35   :  { %164 = vperm.xlu1 %561, %v36_v7   ;;  %160 = vperm.xlu2 %559, %v35_v8  }
  0x36   :  { %563 = vset.pattern.permute.xlu0 %v602_v11 }
  0x37   :  { %209 = vperm.xlu0 %563, %v35_v8  }
  0x3d   :  { %562 = vset.pattern.permute.xlu1 %v602_v11  ;;  %156 = vperm.xlu2 %559, %v34_v4  }
  0x3e   :  { %213 = vperm.xlu1 %562, %v36_v7  }
  0x3f   :  { %201 = vperm.xlu0 %563, %v33_v0  }
  0x45   :  { %565 = vset.pattern.permute.xlu2 %v602_v11 }
  0x46   :  { %564 = vset.pattern.permute.xlu1 %v601_v10  ;;  %205 = vperm.xlu2 %565, %v34_v4  }
  0x47   :  { %197 = vperm.xlu0 %563, %v32_v5   ;;  %152 = vperm.xlu1 %564, %v33_v0  }
  0x4e   :  { %567 = vset.pattern.permute.xlu2 %v601_v10 }
  0x4f   :  { %569 = vset.pattern.permute.xlu0 %v599_v3  ;;  %566 = vset.pattern.permute.xlu1 %v599_v3 }
  0x50   :  { %148 = vperm.xlu2 %567, %v32_v5   ;;  %263 = vperm.xlu0 %569, %v237_v12  }
  0x51   :  { %278 = vperm.xlu1 %566, %v240_v13   ;;  %v807_v13 = vperm.slane %v728_v25, 3 }
  0x58   :  { %144 = vperm.xlu2 %567, %v650_v1   ;;  %248 = vperm.xlu0 %569, %v234_v14  }
  0x59   :  { %273 = vperm.xlu1 %566, %v239_v15  }
  0x5c   :  { %v700_v16 = vpop.permute.xlu2 %59 }
  0x60   :  { %568 = vset.pattern.permute.xlu2 %v602_v11  ;;  %320 = vperm.xlu0 %569, %v306_v17  }
  0x61   :  { %268 = vperm.xlu1 %566, %v238_v18   ;;  %193 = vperm.xlu2 %568, %v650_v1   ;;  %v434_v1 = vld [vmem:[%s887_s5 + $0x38] sm:$0xff] }
  0x64   :  { %v709_v19 = vpop.permute.xlu2 %64 }
  0x68   :  { %335 = vperm.xlu0 %569, %v309_v20  }
  0x69   :  { %570 = vset.pattern.permute.xlu1 %v602_v11  ;;  %571 = vset.pattern.permute.xlu2 %v599_v3 }
  0x6a   :  { %189 = vperm.xlu1 %570, %v671_v6   ;;  %258 = vperm.xlu2 %571, %v236_v21  }
  0x6e   :  { %v88_v23 = vpop.permute.xlu2 %87 }
  0x6f   :  { %v119_v28 = vmul.f32 %v731_v26, %v88_v23 }
  0x70   :  { %447 = vperm.xlu0 %569, %v429_v22  }
  0x72   :  { %185 = vperm.xlu1 %570, %v655_v2   ;;  %253 = vperm.xlu2 %571, %v235_v24   ;;  %v433_v2 = vld [vmem:[%s887_s5 + $0x30] sm:$0xff] }
  0x75   :  { %v738_v29 = vpop.permute.xlu1 %49  ;;  %v40_v30 = vpop.permute.xlu0 %39 }
  0x76   :  { %v100_v32 = vpop.permute.xlu2 %99  ;;  %v78_v33 = vmul.f32 %v735_v27, %v40_v30 }
  0x77   :  { %v122_v37 = vmul.f32 %v731_v26, %v100_v32 }
  0x78   :  { %v127_v35 = vadd.f32 %v119_v28, %v78_v33  ;;  %345 = vperm.xlu0 %569, %v311_v31  }
  0x7a   :  { %572 = vset.pattern.permute.xlu1 %v599_v3  ;;  %315 = vperm.xlu2 %571, %v305_v34  }
  0x7b   :  { %243 = vperm.xlu1 %572, %v233_v36  }
  0x7d   :  { %v55_v38 = vpop.permute.xlu1 %54  ;;  %v766_v45 = vpop.permute.xlu0 %44 }
  0x7e   :  { %v81_v40 = vmul.f32 %v735_v27, %v55_v38  ;;  %v756_v41 = vpop.permute.xlu2 %107  ;;  %v82_v38 = vmul.f32 %v735_v27, %v700_v16 }
  0x80   :  { %v761_v43 = vadd.f32 %v122_v37, %v81_v40  ;;  %462 = vperm.xlu0 %569, %v432_v39   ;;  %v124_v37 = vmul.f32 %v731_v26, %v756_v41 }
  0x82   :  { %330 = vperm.xlu2 %571, %v308_v42   ;;  %v83_v42 = vmul.f32 %v735_v27, %v709_v19  ;;  %v80_v19 = vmul.f32 %v735_v27, %v738_v29 }
  0x83   :  { %325 = vperm.xlu1 %572, %v307_v44  }
  0x85   :  { %v75_v47 = vpop.permute.xlu1 %74  ;;  %v70_v53 = vpop.permute.xlu0 %69 }
  0x86   :  { %v85_v12 = vmul.f32 %v735_v27, %v75_v47  ;;  %v84_v20 = vmul.f32 %v735_v27, %v70_v53 }
  0x87   :  { %v137_v48 = vpop.permute.xlu2 %136 }
  0x88   :  { %v168_v50 = vmul.f32 %v769_v46, %v137_v48 }
  0x8a   :  { %v778_v52 = vadd.f32 %v168_v50, %v127_v35  ;;  %442 = vperm.xlu2 %571, %v428_v49  }
  0x8b   :  { %437 = vperm.xlu1 %572, %v427_v51   ;;  %v132_v51 = vadd.f32 %v124_v37, %v83_v42  ;;  %v304_v37 = vld [vmem:[%s885_s3 + $0x38] sm:$0xff] }
  0x8e   :  { %v780_v54 = vpop.permute.xlu1 %95 }
  0x8f   :  { %v161_v55 = vpop.permute.xlu2 %160  ;;  %v788_v58 = vpop.permute.xlu0 %91  ;;  %v121_v41 = vmul.f32 %v731_v26, %v780_v54 }
  0x90   :  { %v174_v30 = vmul.f32 %v769_v46, %v161_v55 }
  0x92   :  { %452 = vperm.xlu2 %571, %v430_v56  }
  0x93   :  { %340 = vperm.xlu1 %572, %v310_v57  }
  0x96   :  { %v104_v59 = vpop.permute.xlu1 %103 }
  0x97   :  { %v157_v62 = vpop.permute.xlu2 %156  ;;  %v112_v0 = vpop.permute.xlu0 %111  ;;  %v123_v35 = vmul.f32 %v731_v26, %v104_v59 }
  0x98   :  { %v125_v21 = vmul.f32 %v731_v26, %v112_v0  ;;  %v173_v49 = vmul.f32 %v769_v46, %v157_v62  ;;  %v129_v62 = vadd.f32 %v121_v41, %v80_v19 }
  0x99   :  { %v131_v48 = vadd.f32 %v123_v35, %v82_v38  ;;  %v300_v35 = vld [vmem:[%s885_s3 + $0x18] sm:$0xff] }
  0x9a   :  { %350 = vperm.xlu2 %571, %v312_v60   ;;  %v133_v31 = vadd.f32 %v125_v21, %v84_v20  ;;  %v181_v59 = vadd.f32 %v173_v49, %v132_v51 }
  0x9b   :  { %457 = vperm.xlu1 %572, %v431_v61  }
  0x9c   :  { %v182_v36 = vadd.f32 %v174_v30, %v133_v31 }
  0x9e   :  { %v116_v63 = vpop.permute.xlu1 %115 }
  0x9f   :  { %v126_v11 = vmul.f32 %v731_v26, %v116_v63 }
  0xa0   :  { %v206_v3 = vpop.permute.xlu2 %205  ;;  %v802_v5 = vpop.permute.xlu0 %140 }
  0xa1   :  { %v134_v17 = vadd.f32 %v126_v11, %v85_v12  ;;  %v222_v53 = vmul.f32 %v807_v13, %v206_v3  ;;  %v79_v12 = vmul.f32 %v735_v27, %v766_v45 }
  0xa2   :  { %472 = vperm.xlu2 %571, %v434_v1  }
  0xa3   :  { %467 = vperm.xlu1 %572, %v433_v2   ;;  %v230_v2 = vadd.f32 %v222_v53, %v181_v59 }
  0xa7   :  { %v165_v4 = vpop.permute.xlu1 %164 }
  0xa8   :  { %v175_v14 = vmul.f32 %v769_v46, %v165_v4 }
  0xa9   :  { %v210_v8 = vpop.permute.xlu0 %209 }
  0xaa   :  { %v149_v6 = vpop.permute.xlu2 %148  ;;  %v183_v22 = vadd.f32 %v175_v14, %v134_v17  ;;  %v223_v25 = vmul.f32 %v807_v13, %v210_v8  ;;  %v120_v14 = vmul.f32 %v731_v26, %v788_v58  ;;  %v169_v17 = vmul.f32 %v769_v46, %v802_v5 }
  0xab   :  { %v171_v16 = vmul.f32 %v769_v46, %v149_v6 }
  0xac   :  { %v231_v40 = vadd.f32 %v223_v25, %v182_v36  ;;  %v128_v20 = vadd.f32 %v120_v14, %v79_v12  ;;  %v297_v25 = vld [vmem:[%s885_s3] sm:$0xff]  ;;  %v302_v36 = vld [vmem:[%s885_s3 + $0x28] sm:$0xff] }
  0xad   :  { %v179_v63 = vadd.f32 %v171_v16, %v761_v43 }
  0xae   :  { %v177_v26 = vadd.f32 %v169_v17, %v128_v20 }
  0xb0   :  { %v214_v7 = vpop.permute.xlu1 %213 }
  0xb1   :  { %v202_v15 = vpop.permute.xlu0 %201  ;;  %v224_v18 = vmul.f32 %v807_v13, %v214_v7 }
  0xb2   :  { %v145_v9 = vpop.permute.xlu2 %144  ;;  %v221_v55 = vmul.f32 %v807_v13, %v202_v15 }
  0xb3   :  { %v232_v24 = vadd.f32 %v224_v18, %v183_v22  ;;  %v170_v60 = vmul.f32 %v769_v46, %v145_v9 }
  0xb5   :  { %v178_v4 = vadd.f32 %v170_v60, %v129_v62 }
  0xb9   :  { %v153_v10 = vpop.permute.xlu1 %152  ;;  %v198_v34 = vpop.permute.xlu0 %197 }
  0xba   :  { %v172_v39 = vmul.f32 %v769_v46, %v153_v10  ;;  %v220_v61 = vmul.f32 %v807_v13, %v198_v34  ;;  %v298_v34 = vld [vmem:[%s885_s3 + $0x8] sm:$0xff] }
  0xbb   :  { %v194_v23 = vpop.permute.xlu2 %193 }
  0xbc   :  { %v180_v56 = vadd.f32 %v172_v39, %v131_v48  ;;  %v219_v0 = vmul.f32 %v807_v13, %v194_v23  ;;  %v228_v6 = vadd.f32 %v220_v61, %v179_v63 }
  0xbe   :  { %v229_v1 = vadd.f32 %v221_v55, %v180_v56  ;;  %v227_v10 = vadd.f32 %v219_v0, %v178_v4 }
  0xc2   :  { %v264_v54 = vpop.permute.xlu0 %263 }
  0xc3   :  { %v279_v28 = vpop.permute.xlu1 %278  ;;  %v285_v29 = vadd.f32 %v264_v54, %v229_v1 }
  0xc4   :  { %v288_v32 = vadd.f32 %v279_v28, %v232_v24  ;;  %v259_v44 = vpop.permute.xlu2 %258 }
  0xc5   :  { %v284_v9 = vadd.f32 %v259_v44, %v228_v6  ;;  %v293_v43 = vmax.f32 %v285_v29, 0.0 }
  0xc6   :  { %v296_v33 = vmax.f32 %v288_v32, 0.0 }
  0xc7   :  { %v292_v18 = vmax.f32 %v284_v9, 0.0 }
  0xc8   :  { %386 = vmatpush.msra.mxu0 %v296_v33  ;;  %524 = vmatpush.msra.mxu1 %v296_v33 }
  0xc9   :  { %525 = vmatpush.msra.mxu2 %v296_v33  ;;  %526 = vmatpush.msra.mxu3 %v296_v33  ;;  %v299_v33 = vld [vmem:[%s885_s3 + $0x10] sm:$0xff] }
  0xca   :  { %v249_v58 = vpop.permute.xlu0 %248 }
  0xcb   :  { %v274_v47 = vpop.permute.xlu1 %273 }
  0xcc   :  { %v287_v50 = vadd.f32 %v274_v47, %v231_v40  ;;  %v254_v8 = vpop.permute.xlu2 %253 }
  0xcd   :  { %v283_v15 = vadd.f32 %v254_v8, %v227_v10 }
  0xce   :  { %v295_v57 = vmax.f32 %v287_v50, 0.0 }
  0xcf   :  { %v291_v21 = vmax.f32 %v283_v15, 0.0 }
  0xd0   :  { %387 = vmatpush.msra.mxu0 %v295_v57  ;;  %527 = vmatpush.msra.mxu1 %v295_v57 }
  0xd1   :  { %528 = vmatpush.msra.mxu2 %v295_v57  ;;  %529 = vmatpush.msra.mxu3 %v295_v57 }
  0xd2   :  { %v321_v39 = vpop.permute.xlu0 %320 }
  0xd3   :  { %v269_v3 = vpop.permute.xlu1 %268 }
  0xd4   :  { %v286_v7 = vadd.f32 %v269_v3, %v230_v2  ;;  %v316_v38 = vpop.permute.xlu2 %315 }
  0xd6   :  { %v294_v11 = vmax.f32 %v286_v7, 0.0 }
  0xd8   :  { %388 = vmatpush.msra.mxu0 %v294_v11  ;;  %530 = vmatpush.msra.mxu1 %v294_v11 }
  0xd9   :  { %531 = vmatpush.msra.mxu2 %v294_v11  ;;  %532 = vmatpush.msra.mxu3 %v294_v11 }
  0xda   :  { %389 = vmatpush.msra.mxu0 %v293_v43  ;;  %533 = vmatpush.msra.mxu1 %v293_v43  ;;  %v336_v44 = vpop.permute.xlu0 %335 }
  0xdb   :  { %534 = vmatpush.msra.mxu2 %v293_v43  ;;  %535 = vmatpush.msra.mxu3 %v293_v43 }
  0xdc   :  { %v190_v27 = vpop.permute.xlu1 %189  ;;  %390 = vmatpush.msra.mxu0 %v292_v18  ;;  %536 = vmatpush.msra.mxu1 %v292_v18  ;;  %v331_v42 = vpop.permute.xlu2 %330 }
  0xdd   :  { %v218_v45 = vmul.f32 %v807_v13, %v190_v27  ;;  %537 = vmatpush.msra.mxu2 %v292_v18  ;;  %538 = vmatpush.msra.mxu3 %v292_v18 }
  0xde   :  { %391 = vmatpush.msra.mxu0 %v291_v21  ;;  %539 = vmatpush.msra.mxu1 %v291_v21 }
  0xdf   :  { %v226_v46 = vadd.f32 %v218_v45, %v177_v26  ;;  %540 = vmatpush.msra.mxu2 %v291_v21  ;;  %541 = vmatpush.msra.mxu3 %v291_v21 }
  0xe1   :  { %v282_v5 = vadd.f32 %v249_v58, %v226_v46 }
  0xe2   :  { %v448_v49 = vpop.permute.xlu0 %447 }
  0xe3   :  { %v290_v22 = vmax.f32 %v282_v5, 0.0 }
  0xe4   :  { %v186_v23 = vpop.permute.xlu1 %185  ;;  %v443_v48 = vpop.permute.xlu2 %442 }
  0xe5   :  { %392 = vmatpush.msra.mxu0 %v290_v22  ;;  %542 = vmatpush.msra.mxu1 %v290_v22  ;;  %v217_v24 = vmul.f32 %v807_v13, %v186_v23  ;;  %v301_v13 = vld [vmem:[%s885_s3 + $0x20] sm:$0xff] }
  0xe6   :  { %543 = vmatpush.msra.mxu2 %v290_v22  ;;  %544 = vmatpush.msra.mxu3 %v290_v22 }
  0xe7   :  { %v225_v28 = vadd.f32 %v217_v24, %v778_v52  ;;  %v303_v52 = vld [vmem:[%s885_s3 + $0x30] sm:$0xff] }
  0xea   :  { %v346_v54 = vpop.permute.xlu0 %345 }
  0xec   :  { %v453_v53 = vpop.permute.xlu2 %452 }
  0xed   :  { %v244_v30 = vpop.permute.xlu1 %243 }
  0xee   :  { %v281_v31 = vadd.f32 %v244_v30, %v225_v28 }
  0xf0   :  { %v289_v32 = vmax.f32 %v281_v31, 0.0 }
  0xf2   :  { %393 = vmatpush.msra.mxu0 %v289_v32  ;;  %545 = vmatpush.msra.mxu1 %v289_v32  ;;  %v463_v26 = vpop.permute.xlu0 %462 }
  0xf3   :  { %546 = vmatpush.msra.mxu2 %v289_v32  ;;  %547 = vmatpush.msra.mxu3 %v289_v32 }
  0xf4   :  { %516 = vmatmul.msk.f32.vlgmr.msra.gmra.mxu0 %vm353_vm0, %v297_v25  ;;  %518 = vmatmul.msk.f32.vlgmr.msra.gmra.mxu1 %vm353_vm0, %v299_v33  ;;  %v351_v6 = vpop.permute.xlu2 %350 }
  0xf5   :  { %520 = vmatmul.msk.f32.vlgmr.msra.gmra.mxu2 %vm353_vm0, %v301_v13  ;;  %522 = vmatmul.msk.f32.vlgmr.msra.gmra.mxu3 %vm353_vm0, %v303_v52  ;;  %v326_v40 = vpop.permute.xlu1 %325 }
  0xfc   :  { %517 = vmatmul.msk.f32.gmra.mxu0 %vm353_vm0, %v298_v34  ;;  %519 = vmatmul.msk.f32.gmra.mxu1 %vm353_vm0, %v300_v35  ;;  %v473_v24 = vpop.permute.xlu2 %472  ;;  %v497_v34 = vstv %s888_s6 }
  0xfd   :  { %521 = vmatmul.msk.f32.gmra.mxu2 %vm353_vm0, %v302_v36  ;;  %523 = vmatmul.msk.f32.gmra.mxu3 %vm353_vm0, %v304_v37  ;;  %v438_v47 = vpop.permute.xlu1 %437 }
 0x105   :  { %v341_v41 = vpop.permute.xlu1 %340 }
 0x10d   :  { %v458_v2 = vpop.permute.xlu1 %457 }
 0x115   :  { %v468_v5 = vpop.permute.xlu1 %467 }
 0x171   :  { %v395_v50 = vpop.f32.mrf.mxu0  ;;  %v401_v51 = vpop.f32.mrf.mxu1 }
 0x172   :  { %v396_v16 = vadd.f32 %v395_v50, %v316_v38  ;;  %v402_v55 = vadd.f32 %v401_v51, %v326_v40 }
 0x174   :  { %v419_v60 = vmax.f32 %v396_v16, 0.0  ;;  %v421_v63 = vmax.f32 %v402_v55, 0.0 }
 0x176   :  { %v475_v3 = vmul.f32 %v438_v47, %v419_v60  ;;  %v477_v7 = vmul.f32 %v448_v49, %v421_v63 }
 0x178   :  { %v407_v56 = vpop.f32.mrf.mxu2  ;;  %v413_v57 = vpop.f32.mrf.mxu3 }
 0x179   :  { %v398_v19 = vpop.f32.mrf.mxu0  ;;  %v404_v59 = vpop.f32.mrf.mxu1  ;;  %v408_v0 = vadd.f32 %v407_v56, %v336_v44  ;;  %v414_v9 = vadd.f32 %v413_v57, %v346_v54 }
 0x17a   :  { %v399_v61 = vadd.f32 %v398_v19, %v321_v39  ;;  %v405_v62 = vadd.f32 %v404_v59, %v331_v42 }
 0x17b   :  { %v423_v8 = vmax.f32 %v408_v0, 0.0  ;;  %v425_v21 = vmax.f32 %v414_v9, 0.0 }
 0x17c   :  { %v420_v1 = vmax.f32 %v399_v61, 0.0  ;;  %v422_v29 = vmax.f32 %v405_v62, 0.0 }
 0x17d   :  { %v479_v20 = vmul.f32 %v458_v2, %v423_v8  ;;  %v481_v22 = vmul.f32 %v468_v5, %v425_v21 }
 0x17e   :  { %v476_v4 = vmul.f32 %v443_v48, %v420_v1  ;;  %v478_v43 = vmul.f32 %v453_v53, %v422_v29 }
 0x180   :  { %v483_v10 = vadd.f32 %v476_v4, %v475_v3  ;;  %v410_v11 = vpop.f32.mrf.mxu2  ;;  %v416_v12 = vpop.f32.mrf.mxu3 }
 0x181   :  { %v411_v14 = vadd.f32 %v410_v11, %v341_v41  ;;  %v417_v17 = vadd.f32 %v416_v12, %v351_v6 }
 0x182   :  { %v484_v15 = vadd.f32 %v483_v10, %v477_v7 }
 0x183   :  { %v424_v18 = vmax.f32 %v411_v14, 0.0  ;;  %v426_v58 = vmax.f32 %v417_v17, 0.0 }
 0x184   :  { %v485_v27 = vadd.f32 %v484_v15, %v478_v43 }
 0x185   :  { %v480_v45 = vmul.f32 %v463_v26, %v424_v18  ;;  %v482_v28 = vmul.f32 %v473_v24, %v426_v58 }
 0x186   :  { %v486_v46 = vadd.f32 %v485_v27, %v479_v20 }
 0x188   :  { %v487_v23 = vadd.f32 %v486_v46, %v480_v45 }
 0x18a   :  { %v488_v30 = vadd.f32 %v487_v23, %v481_v22 }
 0x18c   :  { %v489_v31 = vadd.f32 %v488_v30, %v482_v28 }
 0x18e   :  { %v490_v32 = vrot.slane %v489_v31, 4 }
 0x190   :  { %v491_v25 = vadd.f32 %v490_v32, %v489_v31 }
 0x192   :  { %v492_v33 = vrot.slane %v491_v25, 2 }
 0x194   :  { %v493_v13 = vadd.f32 %v492_v33, %v491_v25 }
 0x196   :  { %v494_v52 = vrot.slane %v493_v13, 1 }
 0x198   :  { %v495_v35 = vadd.f32 %v494_v52, %v493_v13 }
 0x19a   :  { %v498_v36 = vadd.f32 %v497_v34, %v495_v35 }
 0x19c   :  { %499 = vst [vmem:[#allocation3] sm:$0x1] %v498_v36 }
 0x19d   :  { %510 = dma.vmem_to_hbm [thread:$0]  %s506_s30, 16, %s508_s10, [#allocation4]  }
 0x19e   :  { %597 = dma.done.wait [#allocation4], 16  }
 0x19f   :  { %598 = vsyncadd [#allocation4], 4294967280 }
 0x1a0   :  { %515 = vsyncpa [#allocation4], 1 }

</bundles_post_ra>
